<compile_context>
chip_gen: v7x
topology: tpu7x:2x2x1
jax: 0.10.0
libtpu: 0.0.40
codegen_flags: <defaults>
</compile_context>

<pallas_src>
import functools

import jax
import jax.numpy as jnp
from jax.experimental import pallas as pl
from jax.experimental.pallas import tpu as pltpu


_ACTS = {
    "linear": lambda x: x,
    "relu": lambda x: jnp.maximum(x, 0.0),
    "relu6": lambda x: jnp.clip(x, 0.0, 6.0),
    "sigmoid": jax.nn.sigmoid,
    "tanh": jnp.tanh,
    "elu": jax.nn.elu,
    "softplus": jax.nn.softplus,
    "leaky_relu": lambda x: jnp.where(x >= 0, x, 0.01 * x),
}

_NEG_INF = -1e30


def _round_up(x, m):
    return ((x + m - 1) // m) * m


def _jumping_mlp_kernel(x_ref, w0_ref, wh_ref, bh_ref, wo_ref, bo_ref, out_ref,
                        *, num_hidden, nclass, act):
    act_fn = _ACTS[act]

    # Layer 0: nfeat -> nhid.  bf16 operands into the MXU, f32 accumulation,
    # f32 elementwise bias-add + activation.
    z = jnp.dot(x_ref[...].astype(jnp.bfloat16), w0_ref[...],
                preferred_element_type=jnp.float32)
    h = act_fn(z + bh_ref[pl.ds(0, 1), :])

    # Final layer folded in: logits accumulates h_i @ W_out_chunk_i (f32).
    logits = jnp.dot(h.astype(jnp.bfloat16), wo_ref[0],
                     preferred_element_type=jnp.float32)

    # Hidden layers 1 .. num_hidden-1 (statically unrolled).
    for i in range(1, num_hidden):
        z = jnp.dot(h.astype(jnp.bfloat16), wh_ref[i - 1],
                    preferred_element_type=jnp.float32)
        h = act_fn(z + bh_ref[pl.ds(i, 1), :])
        logits = logits + jnp.dot(h.astype(jnp.bfloat16), wo_ref[i],
                                  preferred_element_type=jnp.float32)

    logits = logits + bo_ref[...]

    # Class dim is padded to 128 lanes for lane-dense stores; mask the pad
    # lanes so they do not perturb log_softmax over the real classes.
    nclass_pad = logits.shape[-1]
    if nclass_pad > nclass:
        lane = jax.lax.broadcasted_iota(jnp.int32, logits.shape, 1)
        logits = jnp.where(lane < nclass, logits, _NEG_INF)

    m = jnp.max(logits, axis=1, keepdims=True)
    lse = m + jnp.log(jnp.sum(jnp.exp(logits - m), axis=1, keepdims=True))
    out_ref[...] = (logits - lse).astype(out_ref.dtype)


def _choose_block_rows(n_rows, nfeat, nhid, nclass_pad, param_bytes,
                       vmem_budget_bytes=24 * 2**20, max_rows=512):
    """Largest row tile keeping double-buffered I/O tiles + live f32
    intermediates + resident params under a conservative VMEM budget (safe for
    v7x's 64 MiB physical / 32 MiB scoped), preferring >=2 grid iterations so
    the parallel batch axis can be sharded across v7x's two TensorCores."""
    bytes_per_row = 4 * (2 * nfeat            # double-buffered x tile
                         + 2 * nclass_pad     # double-buffered out tile
                         + 2 * nhid           # live h / z (f32)
                         + nclass_pad)        # live logits (f32)
    cap = (vmem_budget_bytes - param_bytes) // max(bytes_per_row, 1)
    tb = int(min(max_rows, max(8, cap)))
    half = _round_up(pl.cdiv(n_rows, 2), 8)
    tb = min(tb, max(8, half))
    return max(8, (tb // 8) * 8)


def jumping_mlp_forward(x, weights, biases, *, act="relu", dropout=0.0):
    """Fused JumpingMLP forward (eval mode).

    x: [N, nfeat] float32.
    weights[i]: [in_i, out_i] (transpose of PyTorch nn.Linear.weight).
    biases[i]:  [out_i].
    """
    del dropout  # eval-mode dropout is the identity
    nlayer = len(weights)
    assert nlayer >= 2
    num_hidden = nlayer - 1
    N, nfeat = x.shape
    nhid = weights[0].shape[1]
    nclass = weights[-1].shape[1]
    assert weights[-1].shape[0] == num_hidden * nhid

    nclass_pad = _round_up(nclass, 128)

    # ---- pack parameters into a handful of resident arrays ------------------
    w0 = weights[0].astype(jnp.bfloat16)                              # [nfeat, nhid]
    if num_hidden > 1:
        wh = jnp.stack(weights[1:num_hidden]).astype(jnp.bfloat16)    # [nh-1, nhid, nhid]
    else:
        wh = jnp.zeros((1, nhid, nhid), jnp.bfloat16)                 # unused dummy
    bh = jnp.stack(biases[:num_hidden]).astype(jnp.float32)           # [nh, nhid]
    w_out = jnp.pad(weights[-1], ((0, 0), (0, nclass_pad - nclass)))
    wo = w_out.reshape(num_hidden, nhid, nclass_pad).astype(jnp.bfloat16)
    bo = jnp.pad(biases[-1], (0, nclass_pad - nclass)).reshape(1, nclass_pad)
    bo = bo.astype(jnp.float32)
    params = (w0, wh, bh, wo, bo)
    param_bytes = sum(int(p.size) * p.dtype.itemsize for p in params)

    # ---- batch tiling (remainder handled by zero-padding + slice-back) ------
    tb = _choose_block_rows(N, nfeat, nhid, nclass_pad, param_bytes)
    n_pad = _round_up(N, tb)
    if n_pad != N:
        x = jnp.pad(x, ((0, n_pad - N), (0, 0)))
    grid = (n_pad // tb,)

    in_specs = [
        pl.BlockSpec((tb, nfeat), lambda i: (i, 0)),       # x: streamed per tile
        pl.BlockSpec(w0.shape, lambda i: (0, 0)),          # params: constant index
        pl.BlockSpec(wh.shape, lambda i: (0, 0, 0)),
        pl.BlockSpec(bh.shape, lambda i: (0, 0)),
        pl.BlockSpec(wo.shape, lambda i: (0, 0, 0)),
        pl.BlockSpec(bo.shape, lambda i: (0, 0)),
    ]
    out_specs = pl.BlockSpec((tb, nclass_pad), lambda i: (i, 0))

    kernel = functools.partial(
        _jumping_mlp_kernel, num_hidden=num_hidden, nclass=nclass, act=act)

    out_padded = pl.pallas_call(
        kernel,
        grid=grid,
        in_specs=in_specs,
        out_specs=out_specs,
        out_shape=jax.ShapeDtypeStruct((n_pad, nclass_pad), jnp.float32),
        compiler_params=pltpu.CompilerParams(
            dimension_semantics=("parallel",),
            vmem_limit_bytes=32 * 1024 * 1024,
        ),
    )(x, *params)

    return out_padded[:N, :nclass]


def _init_params(key, nfeat, nhid, nclass, nlayer):
    """PyTorch-style uniform(+-1/sqrt(fan_in)) Linear init, stored as [in, out]."""
    in_dims = [nfeat] + [nhid] * (nlayer - 2) + [nhid * (nlayer - 1)]
    out_dims = [nhid] * (nlayer - 1) + [nclass]
    weights, biases = [], []
    for fan_in, fan_out in zip(in_dims, out_dims):
        key, kw, kb = jax.random.split(key, 3)
        bound = 1.0 / float(fan_in) ** 0.5
        w = jax.random.uniform(kw, (fan_in, fan_out), jnp.float32, -bound, bound)
        b = jax.random.uniform(kb, (fan_out,), jnp.float32, -bound, bound)
        weights.append(w)
        biases.append(b)
    return weights, biases


def _jumping_mlp_reference(x, weights, biases, *, act):
    """Pure-JAX f32 reference matching the PyTorch forward (eval mode)."""
    act_fn = _ACTS[act]
    h = x
    layer_outputs = []
    for w, b in zip(weights[:-1], biases[:-1]):
        h = act_fn(h @ w + b)
        layer_outputs.append(h)
    cat = jnp.concatenate(layer_outputs, axis=1)
    logits = cat @ weights[-1] + biases[-1]
    return jax.nn.log_softmax(logits, axis=1)


if __name__ == "__main__":
    nfeat, nhid, nclass, nlayer = 32, 32, 8, 4
    N = 200  # exercises >1 grid iteration and the remainder-padding path
    act = "relu"

    key = jax.random.PRNGKey(0)
    key, kx = jax.random.split(key)
    x = jax.random.normal(kx, (N, nfeat), jnp.float32)
    weights, biases = _init_params(key, nfeat, nhid, nclass, nlayer)

    out = jax.block_until_ready(jumping_mlp_forward(x, weights, biases, act=act))
    ref = _jumping_mlp_reference(x, weights, biases, act=act)

    assert out.shape == (N, nclass)
    assert bool(jnp.all(jnp.isfinite(out)))
    # log_softmax rows must exponentiate-sum to ~1 over the real classes
    assert jnp.allclose(jnp.sum(jnp.exp(out), axis=1), 1.0, atol=1e-4)
    # match the f32 reference within bf16-matmul tolerance
    assert jnp.allclose(out, ref, atol=1e-1, rtol=0.0), float(
        jnp.max(jnp.abs(out - ref)))
    print("KERNEL_OK")
</pallas_src>

<mosaic_0001>
module attributes {stable_mosaic.version = 11 : i64} {
  func.func @_jumping_mlp_kernel(%arg0: i32, %arg1: memref<104x32xf32, #tpu.memory_space<vmem>>, %arg2: memref<32x32xbf16, #tpu.memory_space<vmem>>, %arg3: memref<2x32x32xbf16, #tpu.memory_space<vmem>>, %arg4: memref<3x32xf32, #tpu.memory_space<vmem>>, %arg5: memref<3x32x128xbf16, #tpu.memory_space<vmem>>, %arg6: memref<1x128xf32, #tpu.memory_space<vmem>>, %arg7: memref<104x128xf32, #tpu.memory_space<vmem>>) attributes {dimension_semantics = [#tpu.dimension_semantics<parallel>], iteration_bounds = array<i64: 2>, scalar_prefetch = 0 : i64, scratch_operands = 0 : i64, tpu.core_type = #tpu.core_type<tc>, window_params = [{transform_indices = @transform_0, window_bounds = array<i64: 104, 32>}, {pipeline_mode = #tpu.pipeline_mode<synchronous>, transform_indices = @transform_1, window_bounds = array<i64: 32, 32>}, {pipeline_mode = #tpu.pipeline_mode<synchronous>, transform_indices = @transform_2, window_bounds = array<i64: 2, 32, 32>}, {pipeline_mode = #tpu.pipeline_mode<synchronous>, transform_indices = @transform_3, window_bounds = array<i64: 3, 32>}, {pipeline_mode = #tpu.pipeline_mode<synchronous>, transform_indices = @transform_4, window_bounds = array<i64: 3, 32, 128>}, {pipeline_mode = #tpu.pipeline_mode<synchronous>, transform_indices = @transform_5, window_bounds = array<i64: 1, 128>}, {transform_indices = @transform_6, window_bounds = array<i64: 104, 128>}]} {
    %c0 = arith.constant 0 : index
    %c0_0 = arith.constant 0 : index
    %0 = vector.load %arg1[%c0, %c0_0] : memref<104x32xf32, #tpu.memory_space<vmem>>, vector<104x32xf32>
    %1 = arith.truncf %0 : vector<104x32xf32> to vector<104x32xbf16>
    %c0_1 = arith.constant 0 : index
    %c0_2 = arith.constant 0 : index
    %2 = vector.load %arg2[%c0_1, %c0_2] : memref<32x32xbf16, #tpu.memory_space<vmem>>, vector<32x32xbf16>
    %cst = arith.constant dense<0.000000e+00> : vector<104x32xf32>
    %3 = tpu.matmul %1, %2, %cst {dimension_numbers = #tpu.dot_dimension_numbers<[1], [0], [0], [1], [0, 0, 1, 1], [], []>} : vector<104x32xbf16>, vector<32x32xbf16>, vector<104x32xf32> -> vector<104x32xf32>
    %c0_3 = arith.constant 0 : index
    %c0_4 = arith.constant 0 : index
    %4 = vector.load %arg4[%c0_3, %c0_4] : memref<3x32xf32, #tpu.memory_space<vmem>>, vector<1x32xf32>
    %5 = vector.broadcast %4 : vector<1x32xf32> to vector<104x32xf32>
    %6 = arith.addf %3, %5 : vector<104x32xf32>
    %cst_5 = arith.constant 0.000000e+00 : f32
    %7 = vector.broadcast %cst_5 : f32 to vector<104x32xf32>
    %8 = arith.maximumf %6, %7 : vector<104x32xf32>
    %9 = arith.truncf %8 : vector<104x32xf32> to vector<104x32xbf16>
    %c0_6 = arith.constant 0 : index
    %c0_7 = arith.constant 0 : index
    %c0_8 = arith.constant 0 : index
    %10 = vector.load %arg5[%c0_6, %c0_7, %c0_8] : memref<3x32x128xbf16, #tpu.memory_space<vmem>>, vector<1x32x128xbf16>
    %11 = vector.shape_cast %10 : vector<1x32x128xbf16> to vector<32x128xbf16>
    %cst_9 = arith.constant dense<0.000000e+00> : vector<104x128xf32>
    %12 = tpu.matmul %9, %11, %cst_9 {dimension_numbers = #tpu.dot_dimension_numbers<[1], [0], [0], [1], [0, 0, 1, 1], [], []>} : vector<104x32xbf16>, vector<32x128xbf16>, vector<104x128xf32> -> vector<104x128xf32>
    %13 = arith.truncf %8 : vector<104x32xf32> to vector<104x32xbf16>
    %c0_10 = arith.constant 0 : index
    %c0_11 = arith.constant 0 : index
    %c0_12 = arith.constant 0 : index
    %14 = vector.load %arg3[%c0_10, %c0_11, %c0_12] : memref<2x32x32xbf16, #tpu.memory_space<vmem>>, vector<1x32x32xbf16>
    %15 = vector.shape_cast %14 : vector<1x32x32xbf16> to vector<32x32xbf16>
    %cst_13 = arith.constant dense<0.000000e+00> : vector<104x32xf32>
    %16 = tpu.matmul %13, %15, %cst_13 {dimension_numbers = #tpu.dot_dimension_numbers<[1], [0], [0], [1], [0, 0, 1, 1], [], []>} : vector<104x32xbf16>, vector<32x32xbf16>, vector<104x32xf32> -> vector<104x32xf32>
    %c1 = arith.constant 1 : index
    %c0_14 = arith.constant 0 : index
    %17 = vector.load %arg4[%c1, %c0_14] : memref<3x32xf32, #tpu.memory_space<vmem>>, vector<1x32xf32>
    %18 = vector.broadcast %17 : vector<1x32xf32> to vector<104x32xf32>
    %19 = arith.addf %16, %18 : vector<104x32xf32>
    %cst_15 = arith.constant 0.000000e+00 : f32
    %20 = vector.broadcast %cst_15 : f32 to vector<104x32xf32>
    %21 = arith.maximumf %19, %20 : vector<104x32xf32>
    %22 = arith.truncf %21 : vector<104x32xf32> to vector<104x32xbf16>
    %c1_16 = arith.constant 1 : index
    %c0_17 = arith.constant 0 : index
    %c0_18 = arith.constant 0 : index
    %23 = vector.load %arg5[%c1_16, %c0_17, %c0_18] : memref<3x32x128xbf16, #tpu.memory_space<vmem>>, vector<1x32x128xbf16>
    %24 = vector.shape_cast %23 : vector<1x32x128xbf16> to vector<32x128xbf16>
    %cst_19 = arith.constant dense<0.000000e+00> : vector<104x128xf32>
    %25 = tpu.matmul %22, %24, %cst_19 {dimension_numbers = #tpu.dot_dimension_numbers<[1], [0], [0], [1], [0, 0, 1, 1], [], []>} : vector<104x32xbf16>, vector<32x128xbf16>, vector<104x128xf32> -> vector<104x128xf32>
    %26 = arith.addf %12, %25 : vector<104x128xf32>
    %27 = arith.truncf %21 : vector<104x32xf32> to vector<104x32xbf16>
    %c1_20 = arith.constant 1 : index
    %c0_21 = arith.constant 0 : index
    %c0_22 = arith.constant 0 : index
    %28 = vector.load %arg3[%c1_20, %c0_21, %c0_22] : memref<2x32x32xbf16, #tpu.memory_space<vmem>>, vector<1x32x32xbf16>
    %29 = vector.shape_cast %28 : vector<1x32x32xbf16> to vector<32x32xbf16>
    %cst_23 = arith.constant dense<0.000000e+00> : vector<104x32xf32>
    %30 = tpu.matmul %27, %29, %cst_23 {dimension_numbers = #tpu.dot_dimension_numbers<[1], [0], [0], [1], [0, 0, 1, 1], [], []>} : vector<104x32xbf16>, vector<32x32xbf16>, vector<104x32xf32> -> vector<104x32xf32>
    %c2 = arith.constant 2 : index
    %c0_24 = arith.constant 0 : index
    %31 = vector.load %arg4[%c2, %c0_24] : memref<3x32xf32, #tpu.memory_space<vmem>>, vector<1x32xf32>
    %32 = vector.broadcast %31 : vector<1x32xf32> to vector<104x32xf32>
    %33 = arith.addf %30, %32 : vector<104x32xf32>
    %cst_25 = arith.constant 0.000000e+00 : f32
    %34 = vector.broadcast %cst_25 : f32 to vector<104x32xf32>
    %35 = arith.maximumf %33, %34 : vector<104x32xf32>
    %36 = arith.truncf %35 : vector<104x32xf32> to vector<104x32xbf16>
    %c2_26 = arith.constant 2 : index
    %c0_27 = arith.constant 0 : index
    %c0_28 = arith.constant 0 : index
    %37 = vector.load %arg5[%c2_26, %c0_27, %c0_28] : memref<3x32x128xbf16, #tpu.memory_space<vmem>>, vector<1x32x128xbf16>
    %38 = vector.shape_cast %37 : vector<1x32x128xbf16> to vector<32x128xbf16>
    %cst_29 = arith.constant dense<0.000000e+00> : vector<104x128xf32>
    %39 = tpu.matmul %36, %38, %cst_29 {dimension_numbers = #tpu.dot_dimension_numbers<[1], [0], [0], [1], [0, 0, 1, 1], [], []>} : vector<104x32xbf16>, vector<32x128xbf16>, vector<104x128xf32> -> vector<104x128xf32>
    %40 = arith.addf %26, %39 : vector<104x128xf32>
    %c0_30 = arith.constant 0 : index
    %c0_31 = arith.constant 0 : index
    %41 = vector.load %arg6[%c0_30, %c0_31] : memref<1x128xf32, #tpu.memory_space<vmem>>, vector<1x128xf32>
    %42 = vector.broadcast %41 : vector<1x128xf32> to vector<104x128xf32>
    %43 = arith.addf %40, %42 : vector<104x128xf32>
    %44 = tpu.iota {dimensions = array<i32: 1>} : vector<104x128xi32>
    %c8_i32 = arith.constant 8 : i32
    %45 = vector.broadcast %c8_i32 : i32 to vector<104x128xi32>
    %46 = arith.cmpi slt, %44, %45 : vector<104x128xi32>
    %cst_32 = arith.constant -1.000000e+30 : f32
    %47 = vector.broadcast %cst_32 : f32 to vector<104x128xf32>
    %48 = arith.select %46, %43, %47 : vector<104x128xi1>, vector<104x128xf32>
    %cst_33 = arith.constant dense<0xFF800000> : vector<104xf32>
    %49 = vector.multi_reduction <maximumf>, %48, %cst_33 [1] : vector<104x128xf32> to vector<104xf32>
    %50 = vector.shape_cast %49 : vector<104xf32> to vector<104x1xf32>
    %51 = vector.broadcast %50 : vector<104x1xf32> to vector<104x128xf32>
    %52 = arith.subf %48, %51 : vector<104x128xf32>
    %53 = math.exp %52 : vector<104x128xf32>
    %cst_34 = arith.constant dense<0.000000e+00> : vector<104xf32>
    %54 = vector.multi_reduction <add>, %53, %cst_34 [1] : vector<104x128xf32> to vector<104xf32>
    %55 = vector.shape_cast %54 : vector<104xf32> to vector<104x1xf32>
    %56 = math.log %55 : vector<104x1xf32>
    %57 = arith.addf %50, %56 : vector<104x1xf32>
    %58 = vector.broadcast %57 : vector<104x1xf32> to vector<104x128xf32>
    %59 = arith.subf %48, %58 : vector<104x128xf32>
    %c0_35 = arith.constant 0 : index
    %c0_36 = arith.constant 0 : index
    %60 = vector.load %arg7[%c0_35, %c0_36] : memref<104x128xf32, #tpu.memory_space<vmem>>, vector<104x128xf32>
    tpu.vector_store %arg7[%c0_35, %c0_36], %59 {strides = array<i32>} : memref<104x128xf32, #tpu.memory_space<vmem>>, vector<104x128xf32>,
    return
  }
  func.func @transform_0(%arg0: i32) -> (i32, i32) {
    %c0_i32 = arith.constant 0 : i32
    %c0_i32_0 = arith.constant 0 : i32
    return %arg0, %c0_i32 : i32, i32
  }
  func.func @transform_1(%arg0: i32) -> (i32, i32) {
    %c0_i32 = arith.constant 0 : i32
    %c0_i32_0 = arith.constant 0 : i32
    %c0_i32_1 = arith.constant 0 : i32
    return %c0_i32, %c0_i32_0 : i32, i32
  }
  func.func @transform_2(%arg0: i32) -> (i32, i32, i32) {
    %c0_i32 = arith.constant 0 : i32
    %c0_i32_0 = arith.constant 0 : i32
    %c0_i32_1 = arith.constant 0 : i32
    %c0_i32_2 = arith.constant 0 : i32
    return %c0_i32, %c0_i32_0, %c0_i32_1 : i32, i32, i32
  }
  func.func @transform_3(%arg0: i32) -> (i32, i32) {
    %c0_i32 = arith.constant 0 : i32
    %c0_i32_0 = arith.constant 0 : i32
    %c0_i32_1 = arith.constant 0 : i32
    return %c0_i32, %c0_i32_0 : i32, i32
  }
  func.func @transform_4(%arg0: i32) -> (i32, i32, i32) {
    %c0_i32 = arith.constant 0 : i32
    %c0_i32_0 = arith.constant 0 : i32
    %c0_i32_1 = arith.constant 0 : i32
    %c0_i32_2 = arith.constant 0 : i32
    return %c0_i32, %c0_i32_0, %c0_i32_1 : i32, i32, i32
  }
  func.func @transform_5(%arg0: i32) -> (i32, i32) {
    %c0_i32 = arith.constant 0 : i32
    %c0_i32_0 = arith.constant 0 : i32
    %c0_i32_1 = arith.constant 0 : i32
    return %c0_i32, %c0_i32_0 : i32, i32
  }
  func.func @transform_6(%arg0: i32) -> (i32, i32) {
    %c0_i32 = arith.constant 0 : i32
    %c0_i32_0 = arith.constant 0 : i32
    return %arg0, %c0_i32 : i32, i32
  }
}

</mosaic_0001>

<bundles_post_ra>
// kernel: tpu_custom_call.1
= control target key start
LH: loop header
LB: loop body
LE: loop exit
PB: predicated region body
PF: predicated region fallthrough
CT: control target
= control target key end

     0   :  { %11 = vsyncpa [#allocation3], 0  ;;  %s2463_s0 = inlined_call_operand.vmem [shape: f32[208,32], index: 0, kind: input, shape index: {}]   ;;  %s2464_s1 = inlined_call_operand.vmem [shape: bf16[32,32], index: 1, kind: input, shape index: {}]   ;;  %s2465_s2 = inlined_call_operand.vmem [shape: bf16[2,32,32], index: 2, kind: input, shape index: {}]   ;;  %s2466_s3 = inlined_call_operand.vmem [shape: f32[3,32], index: 3, kind: input, shape index: {}]   ;;  %s2467_s4 = inlined_call_operand.vmem [shape: bf16[3,32,128], index: 4, kind: input, shape index: {}]   ;;  %s2468_s5 = inlined_call_operand.vmem [shape: f32[1,128], index: 5, kind: input, shape index: {}]   ;;  %s2469_s6 = inlined_call_operand.hbm [shape: f32[208,128], index: 6, kind: output, shape index: {}]  }
   0x1   :  { %13 = vsyncpa [#allocation3 + $0x1], 0  ;;  %s1879_s21 = smov 0   ;;  %s1881_s22 = smov 0  }
   0x2   :  { %s1883_s23 = smov 0   ;;  %s1885_s24 = smov 0  }
   0x3 LB: > { %s1900_s25 = sadd.s32 4294967295, %s1837_s24   ;;  %s1342_s26 = sadd.s32 4294967294, %s1837_s24   ;;  %s1837_s24 = sphi %s1885_s24, %s2475_s24   ;;  %s1833_s23 = sphi %s1883_s23, %s2474_s23   ;;  %s1829_s22 = sphi %s1881_s22, %s2473_s22   ;;  %s1825_s21 = sphi %s1879_s21, %s2472_s21  }
   0x4   : > { %s1904_s27 = sadd.s32 1, %s1837_s24   ;;  %s157_s28 = sadd.s32 1, %s1833_s23 }
   0x5   : > { %s154_s29 = ssub.s32 %s1837_s24, %s1904_s27  ;;  %p167_p0 = scmp.ne.s32.totalorder %s1833_s23, %s1829_s22 }
   0x6   : > { %p155_p1 = scmp.eq.s32.totalorder %s154_s29, 0  ;;  %p168_p2 = scmp.eq.s32.totalorder %s1900_s25, 1 }
   0x7   : > { %p173_p3 = scmp.ne.s32.totalorder %s1829_s22, %s1825_s21  ;;  %p174_p4 = scmp.eq.s32.totalorder %s1342_s26, 1 }
   0x8   : > { %s1915_s30 = scalar_select %p155_p1, %s1833_s23, %s157_s28  }
   0x9   : > { %p1917_p5 = por %p168_p2, %p167_p0  ;;  %p1921_p6 = por %p174_p4, %p173_p3 }
   0xa   : > { %p1345_p7 = scmp.ge.s32.totalorder %s1837_s24, 1  ;;  %p216_p8 = scmp.lt.s32.totalorder %s1837_s24, 3 }
   0xc   : > { %p217_p9 = pnand %p1345_p7, %p216_p8 }
   0xd   : > { %v1711_v0 = vld [vmem:[%s2464_s1] sm:$0xff] (!%p217_p9)   ;;  %v1839_v1 = vmov (!%p217_p9), 0.0   ;;  %v1712_v2 = vld [vmem:[%s2464_s1 + $0x8] sm:$0xff] (!%p217_p9)   ;;  %vm1840_vm0 = vmmov (!%p217_p9), 0   ;;  %s246_s13 = smul.u32 (!%p217_p9), 13, %s1900_s25  ;;  %vm295_vm1 = vcmask (!%p217_p9), 261120  }
   0xe   : > { %220 = sbr.rel (%p217_p9) target bundleno = 1339 (0x53b), region = 44  ;;  %1475 = vmatprep.subr.bf16.mxu0 (!%p217_p9), %v1839_v1  ;;  %1507 = vmatprep.subr.bf16.mxu1 (!%p217_p9), %v1839_v1  ;;  %v1713_v23 = vld [vmem:[%s2465_s2] sm:$0xff] (!%p217_p9)   ;;  %v1714_v24 = vld [vmem:[%s2465_s2 + $0x8] sm:$0xff] (!%p217_p9)   ;;  %v1717_v25 = vld [vmem:[%s2467_s4 + $0x10] sm:$0xff] (!%p217_p9)   ;;  %s243_s16 = sand.u32 (!%p217_p9), 1, %s1829_s22  }
   0xf   : > { %1476 = vmatpush3.bf16.msra.mxu0 (!%p217_p9), %v1711_v0  ;;  %1479 = vmatprep.mubr.msk.bf16.mxu0 (!%p217_p9), %vm1840_vm0, %v1839_v1  ;;  %p247_p10 = scmp.lt.s32.totalorder (!%p217_p9), %s246_s13, 25  ;;  %v1718_v26 = vld [vmem:[%s2467_s4 + $0x18] sm:$0xff] (!%p217_p9)   ;;  %v2000_v27 = vld [vmem:[%s2466_s3] ss:$0 sm:$0xff] (!%p217_p9)  ;;  %v1716_v42 = vld [vmem:[%s2467_s4 + $0x8] sm:$0xff] (!%p217_p9)   ;;  %s1420_s19 = smul.u32 (!%p217_p9), 1664, %s1900_s25 }
  0x10   : > { %1477 = vmatprep.subr.bf16.mxu0 (!%p217_p9), %v1839_v1  ;;  %1511 = vmatprep.mubr.msk.bf16.mxu1 (!%p217_p9), %vm1840_vm0, %v1839_v1  ;;  %v1715_v36 = vld [vmem:[%s2467_s4] sm:$0xff] (!%p217_p9)   ;;  %s2422_s25 = scalar_lea.sflag (!%p217_p9), [#allocation3], %s243_s16  ;;  %s1841_s10 = smov (!%p217_p9), [#allocation2]  }
  0x11   : > { %1508 = vmatpush3.bf16.msra.mxu1 (!%p217_p9), %v1713_v23  ;;  %s2414_s29 = scalar_lea.hbm (!%p217_p9), %s2469_s6, %s1420_s19  ;;  %s1779_s11 = sshll.u32 (!%p217_p9), %s1841_s10, 4  ;;  %s1780_s11 = int_to_ptr.vmem [resolvable:$false] %s1779_s11 }
  0x12   : > { %1509 = vmatprep.subr.bf16.mxu1 (!%p217_p9), %v1839_v1  ;;  %s1781_s12 = scalar_lea.vmem (!%p217_p9), %s1780_s11, 3328 }
  0x13   : > { %1478 = vmatpush3.bf16.msra.mxu0 (!%p217_p9), %v1712_v2 }
  0x14   : > { %1539 = vmatprep.subr.bf16.mxu0 (!%p217_p9), %v1839_v1 }
  0x15   : > { %s2477_s13 = smov (!%p247_p10, %s246_s13), 25  ;;  %1510 = vmatpush3.bf16.msra.mxu1 %v1714_v24 }
  0x16   : > { %s1346_s14 = sshll.u32 %s2477_s13, 3  ;;  %1571 = vmatprep.subr.bf16.mxu1 %v1839_v1 }
  0x17   : > { %s1945_s17 = scalar_lea.vmem %s2463_s0, %s1346_s14 }
  0x18   : > { %v254_v3 = vld [vmem:[%s1945_s17] sm:$0xff]  ;;  %v255_v4 = vld [vmem:[%s1945_s17 + $0x8] sm:$0xff]  ;;  %v256_v6 = vld [vmem:[%s1945_s17 + $0x10] sm:$0xff] }
  0x19   : > { %v267_v5 = vpack.c.bf16 %v255_v4, %v254_v3  ;;  %v257_v7 = vld [vmem:[%s1945_s17 + $0x18] sm:$0xff]  ;;  %v258_v9 = vld [vmem:[%s1945_s17 + $0x20] sm:$0xff]  ;;  %v259_v10 = vld [vmem:[%s1945_s17 + $0x28] sm:$0xff] }
  0x1a   : > { %v268_v8 = vpack.c.bf16 %v257_v7, %v256_v6  ;;  %v269_v11 = vpack.c.bf16 %v259_v10, %v258_v9  ;;  %v260_v12 = vld [vmem:[%s1945_s17 + $0x30] sm:$0xff]  ;;  %v261_v13 = vld [vmem:[%s1945_s17 + $0x38] sm:$0xff]  ;;  %v262_v15 = vld [vmem:[%s1945_s17 + $0x40] sm:$0xff] }
  0x1b   : > { %1480 = vmatmul.mubr.msk.bf16.vlgmr.msra.gmra.mrb[0].mxu0 %vm295_vm1, %v267_v5  ;;  %v270_v14 = vpack.c.bf16 %v261_v13, %v260_v12  ;;  %v263_v16 = vld [vmem:[%s1945_s17 + $0x48] sm:$0xff]  ;;  %v264_v18 = vld [vmem:[%s1945_s17 + $0x50] sm:$0xff]  ;;  %v265_v19 = vld [vmem:[%s1945_s17 + $0x58] sm:$0xff] }
  0x1c   : > { %1483 = vmatprep.mubr.msk.bf16.mxu0 %vm1840_vm0, %v1839_v1  ;;  %v271_v17 = vpack.c.bf16 %v263_v16, %v262_v15  ;;  %v272_v20 = vpack.c.bf16 %v265_v19, %v264_v18  ;;  %v266_v21 = vld [vmem:[%s1945_s17 + $0x60] sm:$0xff]  ;;  %1540 = vmatpush3.bf16.msra.mxu0 %v1717_v25  ;;  %s1667_s17 = smul.u32 104, %s243_s16 }
  0x1d   : > { %v273_v22 = vpack.c.bf16 %v266_v21, %v266_v21  ;;  %1541 = vmatprep.subr.bf16.mxu0 %v1839_v1 }
  0x1e   : > { %s2372_s18 = scalar_lea.vmem [#allocation2], %s1667_s17 }
  0x1f   : > { %s1280_s20 = sshll.u32 %s2372_s18, 4  ;;  %s2416_s20 = int_to_ptr.vmem [resolvable:$true] %s1280_s20 }
  0x20   : > { %1542 = vmatpush3.bf16.msra.mxu0 %v1718_v26  ;;  %s1775_s9 = scalar_lea.vmem %s2416_s20, 1664  ;;  %p1782_p0 = scmp.lt.s32.totalorder %s2416_s20, %s1780_s11 }
  0x21   : > { %1603 = vmatprep.subr.bf16.mxu0 %v1839_v1  ;;  %p1776_p11 = scmp.ne.s32.totalorder %s2416_s20, %s1775_s9  ;;  %p1783_p1 = scmp.lt.s32.totalorder %s1781_s12, %s1775_s9 }
  0x23   : > { %1484 = vmatmul.mubr.msk.bf16.gmra.mrb[4].mxu0 %vm295_vm1, %v268_v8  ;;  %p1777_p12 = pnand %p1776_p11, %p1917_p5  ;;  %p1784_p2 = por %p1783_p1, %p1782_p0 }
  0x24   : > { %1487 = vmatprep.mubr.msk.bf16.mxu0 %vm1840_vm0, %v1839_v1 }
  0x25   : > { %p1778_p13 = pneg %p1777_p12 }
  0x27   : > { %p1785_p3 = pnand %p1784_p2, %p1778_p13 }
  0x2b   : > { %1488 = vmatmul.mubr.msk.bf16.gmra.mrb[8].mxu0 %vm295_vm1, %v269_v11 }
  0x2c   : > { %1491 = vmatprep.mubr.msk.bf16.mxu0 %vm1840_vm0, %v1839_v1 }
  0x33   : > { %1492 = vmatmul.mubr.msk.bf16.gmra.mrb[12].mxu0 %vm295_vm1, %v270_v14 }
  0x34   : > { %1495 = vmatprep.mubr.msk.bf16.mxu0 %vm1840_vm0, %v1839_v1 }
  0x3b   : > { %1496 = vmatmul.mubr.msk.bf16.gmra.mrb[16].mxu0 %vm295_vm1, %v271_v17 }
  0x3c   : > { %1499 = vmatprep.mubr.msk.bf16.mxu0 %vm1840_vm0, %v1839_v1 }
  0x43   : > { %1500 = vmatmul.mubr.msk.bf16.gmra.mrb[20].mxu0 %vm295_vm1, %v272_v20 }
  0x44   : > { %1503 = vmatprep.mubr.msk.bf16.mxu0 %vm1840_vm0, %v1839_v1 }
  0x4b   : > { %1504 = vmatmul.mubr.msk.bf16.gmra.mrb[24].mxu0 %vm295_vm1, %v273_v22 }
  0x4c   : > { %1543 = vmatprep.mubr.msk.bf16.mxu0 %vm1840_vm0, %v1839_v1 }
  0xee   : > { %v351_v28 = vpop.f32.mrb[0].mxu0 }
  0xef   : > { %v352_v29 = vadd.f32 %v2000_v27, %v351_v28  ;;  %v1481_v30 = vpop.f32.mrb[1].mxu0 }
  0xf0   : > { %v354_v31 = vpop.f32.mrb[2].mxu0 }
  0xf1   : > { %v355_v32 = vadd.f32 %v2000_v27, %v354_v31  ;;  %v1482_v33 = vpop.f32.mrb[3].mxu0  ;;  %v405_v34 = vmax.f32 %v352_v29, 0.0 }
  0xf3   : > { %v406_v35 = vmax.f32 %v355_v32, 0.0 }
  0xf5   : > { %v2007_v37 = vpack.c.bf16 %v406_v35, %v405_v34 }
  0xf6   : > { %v359_v38 = vpop.f32.mrb[4].mxu0 }
  0xf7   : > { %v360_v39 = vadd.f32 %v2000_v27, %v359_v38  ;;  %v1485_v40 = vpop.f32.mrb[5].mxu0  ;;  %1512 = vmatmul.mubr.msk.bf16.vlgmr.msra.gmra.mrb[0].mxu1 %vm295_vm1, %v2007_v37 }
  0xf8   : > { %v362_v41 = vpop.f32.mrb[6].mxu0  ;;  %1515 = vmatprep.mubr.msk.bf16.mxu1 %vm1840_vm0, %v1839_v1  ;;  %1572 = vmatpush3.bf16.msra.mxu1 %v1715_v36 }
  0xf9   : > { %v363_v43 = vadd.f32 %v2000_v27, %v362_v41  ;;  %v1486_v44 = vpop.f32.mrb[7].mxu0  ;;  %1573 = vmatprep.subr.bf16.mxu1 %v1839_v1  ;;  %v407_v45 = vmax.f32 %v360_v39, 0.0 }
  0xfb   : > { %v408_v46 = vmax.f32 %v363_v43, 0.0  ;;  %v1720_v43 = vld [vmem:[%s2465_s2 + $0x18] sm:$0xff]  }
  0xfc   : > { %1574 = vmatpush3.bf16.msra.mxu1 %v1716_v42 }
  0xfd   : > { %v419_v47 = vpack.c.bf16 %v408_v46, %v407_v45  ;;  %1635 = vmatprep.subr.bf16.mxu1 %v1839_v1 }
  0xfe   : > { %v367_v48 = vpop.f32.mrb[8].mxu0 }
  0xff   : > { %v368_v49 = vadd.f32 %v2000_v27, %v367_v48  ;;  %v1489_v50 = vpop.f32.mrb[9].mxu0  ;;  %1516 = vmatmul.mubr.msk.bf16.gmra.mrb[4].mxu1 %vm295_vm1, %v419_v47 }
 0x100   : > { %v370_v51 = vpop.f32.mrb[10].mxu0  ;;  %1519 = vmatprep.mubr.msk.bf16.mxu1 %vm1840_vm0, %v1839_v1 }
 0x101   : > { %v371_v52 = vadd.f32 %v2000_v27, %v370_v51  ;;  %v1490_v53 = vpop.f32.mrb[11].mxu0  ;;  %v409_v54 = vmax.f32 %v368_v49, 0.0 }
 0x103   : > { %v410_v55 = vmax.f32 %v371_v52, 0.0 }
 0x105   : > { %v420_v56 = vpack.c.bf16 %v410_v55, %v409_v54 }
 0x106   : > { %v375_v57 = vpop.f32.mrb[12].mxu0 }
 0x107   : > { %v376_v58 = vadd.f32 %v2000_v27, %v375_v57  ;;  %v1493_v59 = vpop.f32.mrb[13].mxu0  ;;  %1520 = vmatmul.mubr.msk.bf16.gmra.mrb[8].mxu1 %vm295_vm1, %v420_v56 }
 0x108   : > { %v378_v60 = vpop.f32.mrb[14].mxu0  ;;  %1523 = vmatprep.mubr.msk.bf16.mxu1 %vm1840_vm0, %v1839_v1 }
 0x109   : > { %v379_v61 = vadd.f32 %v2000_v27, %v378_v60  ;;  %v1494_v62 = vpop.f32.mrb[15].mxu0  ;;  %v411_v63 = vmax.f32 %v376_v58, 0.0 }
 0x10b   : > { %v412_v0 = vmax.f32 %v379_v61, 0.0 }
 0x10d   : > { %v421_v2 = vpack.c.bf16 %v412_v0, %v411_v63 }
 0x10e   : > { %v383_v3 = vpop.f32.mrb[16].mxu0 }
 0x10f   : > { %v384_v4 = vadd.f32 %v2000_v27, %v383_v3  ;;  %v1497_v5 = vpop.f32.mrb[17].mxu0  ;;  %1524 = vmatmul.mubr.msk.bf16.gmra.mrb[12].mxu1 %vm295_vm1, %v421_v2 }
 0x110   : > { %v386_v6 = vpop.f32.mrb[18].mxu0  ;;  %1527 = vmatprep.mubr.msk.bf16.mxu1 %vm1840_vm0, %v1839_v1 }
 0x111   : > { %v387_v7 = vadd.f32 %v2000_v27, %v386_v6  ;;  %v1498_v8 = vpop.f32.mrb[19].mxu0  ;;  %v413_v9 = vmax.f32 %v384_v4, 0.0 }
 0x113   : > { %v414_v10 = vmax.f32 %v387_v7, 0.0 }
 0x115   : > { %v422_v11 = vpack.c.bf16 %v414_v10, %v413_v9 }
 0x116   : > { %v391_v12 = vpop.f32.mrb[20].mxu0 }
 0x117   : > { %v392_v13 = vadd.f32 %v2000_v27, %v391_v12  ;;  %v1501_v14 = vpop.f32.mrb[21].mxu0  ;;  %1528 = vmatmul.mubr.msk.bf16.gmra.mrb[16].mxu1 %vm295_vm1, %v422_v11 }
 0x118   : > { %v394_v15 = vpop.f32.mrb[22].mxu0  ;;  %1531 = vmatprep.mubr.msk.bf16.mxu1 %vm1840_vm0, %v1839_v1 }
 0x119   : > { %v395_v16 = vadd.f32 %v2000_v27, %v394_v15  ;;  %v1502_v17 = vpop.f32.mrb[23].mxu0  ;;  %v415_v18 = vmax.f32 %v392_v13, 0.0 }
 0x11b   : > { %v416_v19 = vmax.f32 %v395_v16, 0.0 }
 0x11d   : > { %v423_v20 = vpack.c.bf16 %v416_v19, %v415_v18 }
 0x11e   : > { %v399_v21 = vpop.f32.mrb[24].mxu0 }
 0x11f   : > { %v400_v22 = vadd.f32 %v2000_v27, %v399_v21  ;;  %1532 = vmatmul.mubr.msk.bf16.gmra.mrb[20].mxu1 %vm295_vm1, %v423_v20  ;;  %v1505_v23 = vpop.f32.mrb[25].mxu0  ;;  %v2072_v27 = vld [vmem:[%s2466_s3 + $0x1] ss:$0 sm:$0xff] }
 0x120   : > { %v402_v24 = vpop.f32.mrb[26].mxu0  ;;  %1535 = vmatprep.mubr.msk.bf16.mxu1 %vm1840_vm0, %v1839_v1 }
 0x121   : > { %v417_v25 = vmax.f32 %v400_v22, 0.0  ;;  %v1506_v26 = vpop.f32.mrb[27].mxu0 }
 0x123   : > { %v424_v28 = vpack.c.bf16 %v417_v25, %v417_v25 }
 0x127   : > { %1536 = vmatmul.mubr.msk.bf16.gmra.mrb[24].mxu1 %vm295_vm1, %v424_v28 }
 0x128   : > { %1575 = vmatprep.mubr.msk.bf16.mxu1 %vm1840_vm0, %v1839_v1 }
 0x12f   : > { %1576 = vmatmul.mubr.msk.bf16.vlgmr.msra.gmra.mrb[28].mxu1 %vm295_vm1, %v2007_v37  ;;  %v1719_v37 = vld [vmem:[%s2465_s2 + $0x10] sm:$0xff]  }
 0x130   : > { %1579 = vmatprep.mubr.msk.bf16.mxu1 %vm1840_vm0, %v1839_v1 }
 0x137   : > { %1580 = vmatmul.mubr.msk.bf16.gmra.mrb[32].mxu1 %vm295_vm1, %v419_v47 }
 0x138   : > { %1583 = vmatprep.mubr.msk.bf16.mxu1 %vm1840_vm0, %v1839_v1 }
 0x13f   : > { %1584 = vmatmul.mubr.msk.bf16.gmra.mrb[36].mxu1 %vm295_vm1, %v420_v56 }
 0x140   : > { %1587 = vmatprep.mubr.msk.bf16.mxu1 %vm1840_vm0, %v1839_v1 }
 0x147   : > { %1588 = vmatmul.mubr.msk.bf16.gmra.mrb[40].mxu1 %vm295_vm1, %v421_v2 }
 0x148   : > { %1591 = vmatprep.mubr.msk.bf16.mxu1 %vm1840_vm0, %v1839_v1 }
 0x14f   : > { %1592 = vmatmul.mubr.msk.bf16.gmra.mrb[44].mxu1 %vm295_vm1, %v422_v11 }
 0x150   : > { %1595 = vmatprep.mubr.msk.bf16.mxu1 %vm1840_vm0, %v1839_v1 }
 0x157   : > { %1596 = vmatmul.mubr.msk.bf16.gmra.mrb[48].mxu1 %vm295_vm1, %v423_v20 }
 0x158   : > { %1599 = vmatprep.mubr.msk.bf16.mxu1 %vm1840_vm0, %v1839_v1 }
 0x15f   : > { %1600 = vmatmul.mubr.msk.bf16.gmra.mrb[52].mxu1 %vm295_vm1, %v424_v28 }
 0x160   : > { %1639 = vmatprep.mubr.msk.bf16.mxu1 %vm1840_vm0, %v1839_v1 }
 0x1ca   : > { %v505_v29 = vpop.f32.mrb[0].mxu1 }
 0x1cb   : > { %v506_v30 = vadd.f32 %v2072_v27, %v505_v29  ;;  %v1513_v31 = vpop.f32.mrb[1].mxu1 }
 0x1cc   : > { %v508_v32 = vpop.f32.mrb[2].mxu1 }
 0x1cd   : > { %v509_v33 = vadd.f32 %v2072_v27, %v508_v32  ;;  %v1514_v34 = vpop.f32.mrb[3].mxu1  ;;  %v559_v35 = vmax.f32 %v506_v30, 0.0 }
 0x1cf   : > { %v560_v36 = vmax.f32 %v509_v33, 0.0 }
 0x1d1   : > { %v2079_v38 = vpack.c.bf16 %v560_v36, %v559_v35 }
 0x1d2   : > { %v513_v39 = vpop.f32.mrb[4].mxu1 }
 0x1d3   : > { %v514_v40 = vadd.f32 %v2072_v27, %v513_v39  ;;  %v1517_v41 = vpop.f32.mrb[5].mxu1  ;;  %1544 = vmatmul.mubr.msk.bf16.vlgmr.msra.gmra.mrb[28].mxu0 %vm295_vm1, %v2079_v38 }
 0x1d4   : > { %1604 = vmatpush3.bf16.msra.mxu0 %v1719_v37  ;;  %v516_v42 = vpop.f32.mrb[6].mxu1  ;;  %1547 = vmatprep.mubr.msk.bf16.mxu0 %vm1840_vm0, %v1839_v1 }
 0x1d5   : > { %v517_v44 = vadd.f32 %v2072_v27, %v516_v42  ;;  %v1518_v45 = vpop.f32.mrb[7].mxu1  ;;  %1605 = vmatprep.subr.bf16.mxu0 %v1839_v1  ;;  %v561_v46 = vmax.f32 %v514_v40, 0.0 }
 0x1d7   : > { %v562_v47 = vmax.f32 %v517_v44, 0.0 }
 0x1d8   : > { %1606 = vmatpush3.bf16.msra.mxu0 %v1720_v43 }
 0x1d9   : > { %v2091_v48 = vpack.c.bf16 %v562_v47, %v561_v46 }
 0x1da   : > { %v521_v49 = vpop.f32.mrb[8].mxu1 }
 0x1db   : > { %v522_v50 = vadd.f32 %v2072_v27, %v521_v49  ;;  %v1521_v51 = vpop.f32.mrb[9].mxu1  ;;  %1548 = vmatmul.mubr.msk.bf16.gmra.mrb[32].mxu0 %vm295_vm1, %v2091_v48 }
 0x1dc   : > { %v524_v52 = vpop.f32.mrb[10].mxu1  ;;  %1551 = vmatprep.mubr.msk.bf16.mxu0 %vm1840_vm0, %v1839_v1 }
 0x1dd   : > { %v525_v53 = vadd.f32 %v2072_v27, %v524_v52  ;;  %v1522_v54 = vpop.f32.mrb[11].mxu1  ;;  %v563_v55 = vmax.f32 %v522_v50, 0.0 }
 0x1df   : > { %v564_v56 = vmax.f32 %v525_v53, 0.0  ;;  %v1721_v53 = vld [vmem:[%s2467_s4 + $0x20] sm:$0xff]  }
 0x1e0   : > { %1636 = vmatpush3.bf16.msra.mxu1 %v1721_v53 }
 0x1e1   : > { %v2099_v57 = vpack.c.bf16 %v564_v56, %v563_v55  ;;  %1637 = vmatprep.subr.bf16.mxu1 %v1839_v1 }
 0x1e2   : > { %v529_v58 = vpop.f32.mrb[12].mxu1 }
 0x1e3   : > { %v530_v59 = vadd.f32 %v2072_v27, %v529_v58  ;;  %v1525_v60 = vpop.f32.mrb[13].mxu1  ;;  %1552 = vmatmul.mubr.msk.bf16.gmra.mrb[36].mxu0 %vm295_vm1, %v2099_v57  ;;  %v1722_v58 = vld [vmem:[%s2467_s4 + $0x28] sm:$0xff]  }
 0x1e4   : > { %v532_v61 = vpop.f32.mrb[14].mxu1  ;;  %1555 = vmatprep.mubr.msk.bf16.mxu0 %vm1840_vm0, %v1839_v1  ;;  %1638 = vmatpush3.bf16.msra.mxu1 %v1722_v58 }
 0x1e5   : > { %v533_v62 = vadd.f32 %v2072_v27, %v532_v61  ;;  %v1526_v63 = vpop.f32.mrb[15].mxu1  ;;  %v565_v0 = vmax.f32 %v530_v59, 0.0 }
 0x1e7   : > { %v566_v2 = vmax.f32 %v533_v62, 0.0 }
 0x1e9   : > { %v575_v3 = vpack.c.bf16 %v566_v2, %v565_v0 }
 0x1ea   : > { %v537_v4 = vpop.f32.mrb[16].mxu1 }
 0x1eb   : > { %v538_v5 = vadd.f32 %v2072_v27, %v537_v4  ;;  %v1529_v6 = vpop.f32.mrb[17].mxu1  ;;  %1556 = vmatmul.mubr.msk.bf16.gmra.mrb[40].mxu0 %vm295_vm1, %v575_v3 }
 0x1ec   : > { %v540_v7 = vpop.f32.mrb[18].mxu1  ;;  %1559 = vmatprep.mubr.msk.bf16.mxu0 %vm1840_vm0, %v1839_v1 }
 0x1ed   : > { %v541_v8 = vadd.f32 %v2072_v27, %v540_v7  ;;  %v1530_v9 = vpop.f32.mrb[19].mxu1  ;;  %v567_v10 = vmax.f32 %v538_v5, 0.0 }
 0x1ef   : > { %v568_v11 = vmax.f32 %v541_v8, 0.0 }
 0x1f1   : > { %v576_v12 = vpack.c.bf16 %v568_v11, %v567_v10 }
 0x1f2   : > { %v545_v13 = vpop.f32.mrb[20].mxu1 }
 0x1f3   : > { %v546_v14 = vadd.f32 %v2072_v27, %v545_v13  ;;  %v1533_v15 = vpop.f32.mrb[21].mxu1  ;;  %1560 = vmatmul.mubr.msk.bf16.gmra.mrb[44].mxu0 %vm295_vm1, %v576_v12 }
 0x1f4   : > { %v548_v16 = vpop.f32.mrb[22].mxu1  ;;  %1563 = vmatprep.mubr.msk.bf16.mxu0 %vm1840_vm0, %v1839_v1 }
 0x1f5   : > { %v549_v17 = vadd.f32 %v2072_v27, %v548_v16  ;;  %v1534_v18 = vpop.f32.mrb[23].mxu1  ;;  %v569_v19 = vmax.f32 %v546_v14, 0.0 }
 0x1f7   : > { %v570_v20 = vmax.f32 %v549_v17, 0.0 }
 0x1f9   : > { %v577_v21 = vpack.c.bf16 %v570_v20, %v569_v19 }
 0x1fa   : > { %v553_v22 = vpop.f32.mrb[24].mxu1 }
 0x1fb   : > { %v554_v23 = vadd.f32 %v2072_v27, %v553_v22  ;;  %v1537_v24 = vpop.f32.mrb[25].mxu1  ;;  %1564 = vmatmul.mubr.msk.bf16.gmra.mrb[48].mxu0 %vm295_vm1, %v577_v21 }
 0x1fc   : > { %v556_v25 = vpop.f32.mrb[26].mxu1  ;;  %1567 = vmatprep.mubr.msk.bf16.mxu0 %vm1840_vm0, %v1839_v1 }
 0x1fd   : > { %v571_v26 = vmax.f32 %v554_v23, 0.0  ;;  %v1538_v28 = vpop.f32.mrb[27].mxu1 }
 0x1ff   : > { %v578_v29 = vpack.c.bf16 %v571_v26, %v571_v26 }
 0x202   : > { %v751_v30 = vpop.f32.mrb[28].mxu1 }
 0x203   : > { %1568 = vmatmul.mubr.msk.bf16.gmra.mrb[52].mxu0 %vm295_vm1, %v578_v29  ;;  %v1577_v31 = vpop.f32.mrb[29].mxu1 }
 0x204   : > { %v754_v32 = vpop.f32.mrb[30].mxu1  ;;  %1607 = vmatprep.mubr.msk.bf16.mxu0 %vm1840_vm0, %v1839_v1 }
 0x205   : > { %v1578_v33 = vpop.f32.mrb[31].mxu1 }
 0x20a   : > { %v759_v27 = vpop.f32.mrb[32].mxu1 }
 0x20b   : > { %v1581_v34 = vpop.f32.mrb[33].mxu1  ;;  %1608 = vmatmul.mubr.msk.bf16.vlgmr.msra.gmra.mrb[56].mxu0 %vm295_vm1, %v2079_v38 }
 0x20c   : > { %v762_v35 = vpop.f32.mrb[34].mxu1  ;;  %1611 = vmatprep.mubr.msk.bf16.mxu0 %vm1840_vm0, %v1839_v1 }
 0x20d   : > { %v1582_v36 = vpop.f32.mrb[35].mxu1 }
 0x212   : > { %v767_v37 = vpop.f32.mrb[36].mxu1 }
 0x213   : > { %v1585_v39 = vpop.f32.mrb[37].mxu1  ;;  %1612 = vmatmul.mubr.msk.bf16.gmra.mrb[60].mxu0 %vm295_vm1, %v2091_v48 }
 0x214   : > { %v770_v40 = vpop.f32.mrb[38].mxu1  ;;  %1615 = vmatprep.mubr.msk.bf16.mxu0 %vm1840_vm0, %v1839_v1 }
 0x215   : > { %v1586_v41 = vpop.f32.mrb[39].mxu1 }
 0x21a   : > { %v775_v42 = vpop.f32.mrb[40].mxu1 }
 0x21b   : > { %v1589_v43 = vpop.f32.mrb[41].mxu1  ;;  %1616 = vmatmul.mubr.msk.bf16.gmra.mrb[64].mxu0 %vm295_vm1, %v2099_v57 }
 0x21c   : > { %v778_v38 = vpop.f32.mrb[42].mxu1  ;;  %1619 = vmatprep.mubr.msk.bf16.mxu0 %vm1840_vm0, %v1839_v1 }
 0x21d   : > { %v1590_v44 = vpop.f32.mrb[43].mxu1 }
 0x222   : > { %v783_v45 = vpop.f32.mrb[44].mxu1 }
 0x223   : > { %v1593_v46 = vpop.f32.mrb[45].mxu1  ;;  %1620 = vmatmul.mubr.msk.bf16.gmra.mrb[68].mxu0 %vm295_vm1, %v575_v3 }
 0x224   : > { %v786_v47 = vpop.f32.mrb[46].mxu1  ;;  %1623 = vmatprep.mubr.msk.bf16.mxu0 %vm1840_vm0, %v1839_v1 }
 0x225   : > { %v1594_v48 = vpop.f32.mrb[47].mxu1 }
 0x22a   : > { %v791_v49 = vpop.f32.mrb[48].mxu1 }
 0x22b   : > { %v1597_v50 = vpop.f32.mrb[49].mxu1  ;;  %1624 = vmatmul.mubr.msk.bf16.gmra.mrb[72].mxu0 %vm295_vm1, %v576_v12 }
 0x22c   : > { %v794_v51 = vpop.f32.mrb[50].mxu1  ;;  %1627 = vmatprep.mubr.msk.bf16.mxu0 %vm1840_vm0, %v1839_v1 }
 0x22d   : > { %v1598_v52 = vpop.f32.mrb[51].mxu1 }
 0x232   : > { %v799_v54 = vpop.f32.mrb[52].mxu1 }
 0x233   : > { %v1601_v55 = vpop.f32.mrb[53].mxu1  ;;  %1628 = vmatmul.mubr.msk.bf16.gmra.mrb[76].mxu0 %vm295_vm1, %v577_v21 }
 0x234   : > { %v802_v56 = vpop.f32.mrb[54].mxu1  ;;  %1631 = vmatprep.mubr.msk.bf16.mxu0 %vm1840_vm0, %v1839_v1 }
 0x235   : > { %v1602_v57 = vpop.f32.mrb[55].mxu1 }
 0x23b   : > { %1632 = vmatmul.mubr.msk.bf16.gmra.mrb[80].mxu0 %vm295_vm1, %v578_v29 }
 0x2a6   : > { %v651_v59 = vpop.f32.mrb[28].mxu0 }
 0x2a7   : > { %v2153_v60 = vadd.f32 %v751_v30, %v651_v59  ;;  %v1545_v61 = vpop.f32.mrb[29].mxu0 }
 0x2a8   : > { %v654_v62 = vpop.f32.mrb[30].mxu0 }
 0x2a9   : > { %v2155_v63 = vadd.f32 %v754_v32, %v654_v62  ;;  %v1546_v0 = vpop.f32.mrb[31].mxu0 }
 0x2ae   : > { %v659_v2 = vpop.f32.mrb[32].mxu0 }
 0x2af   : > { %v2157_v3 = vadd.f32 %v759_v27, %v659_v2  ;;  %v1549_v4 = vpop.f32.mrb[33].mxu0 }
 0x2b0   : > { %v662_v5 = vpop.f32.mrb[34].mxu0 }
 0x2b1   : > { %v2159_v6 = vadd.f32 %v762_v35, %v662_v5  ;;  %v1550_v7 = vpop.f32.mrb[35].mxu0 }
 0x2b6   : > { %v667_v8 = vpop.f32.mrb[36].mxu0 }
 0x2b7   : > { %v2161_v9 = vadd.f32 %v767_v37, %v667_v8  ;;  %v1553_v10 = vpop.f32.mrb[37].mxu0  ;;  %v2182_v37 = vld [vmem:[%s2466_s3 + $0x2] ss:$0 sm:$0xff] }
 0x2b8   : > { %v670_v11 = vpop.f32.mrb[38].mxu0 }
 0x2b9   : > { %v2163_v12 = vadd.f32 %v770_v40, %v670_v11  ;;  %v1554_v13 = vpop.f32.mrb[39].mxu0 }
 0x2be   : > { %v675_v14 = vpop.f32.mrb[40].mxu0 }
 0x2bf   : > { %v2165_v15 = vadd.f32 %v775_v42, %v675_v14  ;;  %v1557_v16 = vpop.f32.mrb[41].mxu0 }
 0x2c0   : > { %v678_v17 = vpop.f32.mrb[42].mxu0 }
 0x2c1   : > { %v2167_v18 = vadd.f32 %v778_v38, %v678_v17  ;;  %v1558_v19 = vpop.f32.mrb[43].mxu0 }
 0x2c6   : > { %v683_v20 = vpop.f32.mrb[44].mxu0 }
 0x2c7   : > { %v2169_v21 = vadd.f32 %v783_v45, %v683_v20  ;;  %v1561_v22 = vpop.f32.mrb[45].mxu0 }
 0x2c8   : > { %v686_v23 = vpop.f32.mrb[46].mxu0 }
 0x2c9   : > { %v2171_v24 = vadd.f32 %v786_v47, %v686_v23  ;;  %v1562_v25 = vpop.f32.mrb[47].mxu0 }
 0x2ce   : > { %v691_v26 = vpop.f32.mrb[48].mxu0 }
 0x2cf   : > { %v2173_v28 = vadd.f32 %v791_v49, %v691_v26  ;;  %v1565_v29 = vpop.f32.mrb[49].mxu0 }
 0x2d0   : > { %v694_v30 = vpop.f32.mrb[50].mxu0 }
 0x2d1   : > { %v2175_v31 = vadd.f32 %v794_v51, %v694_v30  ;;  %v1566_v32 = vpop.f32.mrb[51].mxu0 }
 0x2d6   : > { %v699_v33 = vpop.f32.mrb[52].mxu0 }
 0x2d7   : > { %v2177_v27 = vadd.f32 %v799_v54, %v699_v33  ;;  %v1569_v34 = vpop.f32.mrb[53].mxu0 }
 0x2d8   : > { %v702_v35 = vpop.f32.mrb[54].mxu0 }
 0x2d9   : > { %v1570_v36 = vpop.f32.mrb[55].mxu0 }
 0x2de   : > { %v861_v39 = vpop.f32.mrb[56].mxu0 }
 0x2df   : > { %v862_v40 = vadd.f32 %v2182_v37, %v861_v39  ;;  %v1609_v41 = vpop.f32.mrb[57].mxu0 }
 0x2e0   : > { %v864_v42 = vpop.f32.mrb[58].mxu0 }
 0x2e1   : > { %v865_v43 = vadd.f32 %v2182_v37, %v864_v42  ;;  %v1610_v38 = vpop.f32.mrb[59].mxu0  ;;  %v915_v44 = vmax.f32 %v862_v40, 0.0 }
 0x2e3   : > { %v916_v45 = vmax.f32 %v865_v43, 0.0 }
 0x2e5   : > { %v928_v46 = vpack.c.bf16 %v916_v45, %v915_v44 }
 0x2e6   : > { %v869_v47 = vpop.f32.mrb[60].mxu0 }
 0x2e7   : > { %v870_v48 = vadd.f32 %v2182_v37, %v869_v47  ;;  %v1613_v49 = vpop.f32.mrb[61].mxu0  ;;  %1640 = vmatmul.mubr.msk.bf16.vlgmr.msra.gmra.mrb[56].mxu1 %vm295_vm1, %v928_v46 }
 0x2e8   : > { %v872_v50 = vpop.f32.mrb[62].mxu0  ;;  %1643 = vmatprep.mubr.msk.bf16.mxu1 %vm1840_vm0, %v1839_v1 }
 0x2e9   : > { %v873_v51 = vadd.f32 %v2182_v37, %v872_v50  ;;  %v1614_v52 = vpop.f32.mrb[63].mxu0  ;;  %v917_v53 = vmax.f32 %v870_v48, 0.0  ;;  %v1094_v50 = vlaneseq }
 0x2eb   : > { %v918_v54 = vmax.f32 %v873_v51, 0.0  ;;  %v2216_v51 = vand.u32 127, %v1094_v50 }
 0x2ed   : > { %v929_v55 = vpack.c.bf16 %v918_v54, %v917_v53  ;;  %vm1096_vm2 = vcmp.lt.s32.totalorder %v2216_v51, 8 }
 0x2ee   : > { %v877_v56 = vpop.f32.mrb[64].mxu0 }
 0x2ef   : > { %v878_v57 = vadd.f32 %v2182_v37, %v877_v56  ;;  %v1617_v58 = vpop.f32.mrb[65].mxu0  ;;  %1644 = vmatmul.mubr.msk.bf16.gmra.mrb[60].mxu1 %vm295_vm1, %v929_v55 }
 0x2f0   : > { %v880_v59 = vpop.f32.mrb[66].mxu0  ;;  %1647 = vmatprep.mubr.msk.bf16.mxu1 %vm1840_vm0, %v1839_v1 }
 0x2f1   : > { %v881_v61 = vadd.f32 %v2182_v37, %v880_v59  ;;  %v1618_v62 = vpop.f32.mrb[67].mxu0  ;;  %v919_v0 = vmax.f32 %v878_v57, 0.0 }
 0x2f3   : > { %v920_v2 = vmax.f32 %v881_v61, 0.0 }
 0x2f5   : > { %v930_v4 = vpack.c.bf16 %v920_v2, %v919_v0 }
 0x2f6   : > { %v885_v5 = vpop.f32.mrb[68].mxu0 }
 0x2f7   : > { %v886_v7 = vadd.f32 %v2182_v37, %v885_v5  ;;  %v1621_v8 = vpop.f32.mrb[69].mxu0  ;;  %1648 = vmatmul.mubr.msk.bf16.gmra.mrb[64].mxu1 %vm295_vm1, %v930_v4 }
 0x2f8   : > { %v888_v10 = vpop.f32.mrb[70].mxu0  ;;  %1651 = vmatprep.mubr.msk.bf16.mxu1 %vm1840_vm0, %v1839_v1 }
 0x2f9   : > { %v889_v11 = vadd.f32 %v2182_v37, %v888_v10  ;;  %v1622_v13 = vpop.f32.mrb[71].mxu0  ;;  %v921_v14 = vmax.f32 %v886_v7, 0.0 }
 0x2fb   : > { %v922_v16 = vmax.f32 %v889_v11, 0.0 }
 0x2fd   : > { %v931_v17 = vpack.c.bf16 %v922_v16, %v921_v14 }
 0x2fe   : > { %v893_v19 = vpop.f32.mrb[72].mxu0 }
 0x2ff   : > { %v894_v20 = vadd.f32 %v2182_v37, %v893_v19  ;;  %v1625_v22 = vpop.f32.mrb[73].mxu0  ;;  %1652 = vmatmul.mubr.msk.bf16.gmra.mrb[68].mxu1 %vm295_vm1, %v931_v17 }
 0x300   : > { %v896_v23 = vpop.f32.mrb[74].mxu0  ;;  %1655 = vmatprep.mubr.msk.bf16.mxu1 %vm1840_vm0, %v1839_v1 }
 0x301   : > { %v897_v25 = vadd.f32 %v2182_v37, %v896_v23  ;;  %v1626_v26 = vpop.f32.mrb[75].mxu0  ;;  %v923_v29 = vmax.f32 %v894_v20, 0.0 }
 0x303   : > { %v924_v30 = vmax.f32 %v897_v25, 0.0 }
 0x305   : > { %v932_v32 = vpack.c.bf16 %v924_v30, %v923_v29 }
 0x306   : > { %v901_v33 = vpop.f32.mrb[76].mxu0 }
 0x307   : > { %v902_v34 = vadd.f32 %v2182_v37, %v901_v33  ;;  %v1629_v35 = vpop.f32.mrb[77].mxu0  ;;  %1656 = vmatmul.mubr.msk.bf16.gmra.mrb[72].mxu1 %vm295_vm1, %v932_v32 }
 0x308   : > { %v904_v36 = vpop.f32.mrb[78].mxu0  ;;  %1659 = vmatprep.mubr.msk.bf16.mxu1 %vm1840_vm0, %v1839_v1 }
 0x309   : > { %v905_v39 = vadd.f32 %v2182_v37, %v904_v36  ;;  %v1630_v40 = vpop.f32.mrb[79].mxu0  ;;  %v925_v41 = vmax.f32 %v902_v34, 0.0 }
 0x30b   : > { %v926_v42 = vmax.f32 %v905_v39, 0.0 }
 0x30d   : > { %v933_v43 = vpack.c.bf16 %v926_v42, %v925_v41 }
 0x30e   : > { %v909_v38 = vpop.f32.mrb[80].mxu0 }
 0x30f   : > { %v910_v44 = vadd.f32 %v2182_v37, %v909_v38  ;;  %v1633_v45 = vpop.f32.mrb[81].mxu0  ;;  %1660 = vmatmul.mubr.msk.bf16.gmra.mrb[76].mxu1 %vm295_vm1, %v933_v43  ;;  %v2221_v37 = vld [vmem:[%s2468_s5] ss:$0 sm:$0xff] }
 0x310   : > { %v912_v46 = vpop.f32.mrb[82].mxu0  ;;  %1663 = vmatprep.mubr.msk.bf16.mxu1 %vm1840_vm0, %v1839_v1 }
 0x311   : > { %v927_v47 = vmax.f32 %v910_v44, 0.0  ;;  %v1634_v48 = vpop.f32.mrb[83].mxu0 }
 0x313   : > { %v934_v49 = vpack.c.bf16 %v927_v47, %v927_v47 }
 0x317   : > { %1664 = vmatmul.mubr.msk.bf16.gmra.mrb[80].mxu1 %vm295_vm1, %v934_v49 }
 0x3ba   : > { %v1007_v52 = vpop.f32.mrb[56].mxu1 }
 0x3bb   : > { %v1061_v53 = vadd.f32 %v1007_v52, %v2153_v60  ;;  %v1641_v54 = vpop.f32.mrb[57].mxu1 }
 0x3bc   : > { %v1010_v55 = vpop.f32.mrb[58].mxu1 }
 0x3bd   : > { %v1081_v1 = vadd.f32 %v2221_v37, %v1061_v53  ;;  %v1062_v56 = vadd.f32 %v1010_v55, %v2155_v63  ;;  %v1642_v57 = vpop.f32.mrb[59].mxu1 }
 0x3bf   : > { %v1082_v58 = vadd.f32 %v2221_v37, %v1062_v56  ;;  %v2230_v59 = vsel %vm1096_vm2, %v1081_v1, -1e+30 }
 0x3c0   : > { %1110 = vmax.xlane.f32.xlu0 %v2230_v59 }
 0x3c1   : > { %v2236_v0 = vsel %vm1096_vm2, %v1082_v58, -1e+30 }
 0x3c2   : > { %v1015_v61 = vpop.f32.mrb[60].mxu1 }
 0x3c3   : > { %v1063_v60 = vadd.f32 %v1015_v61, %v2157_v3  ;;  %v1645_v62 = vpop.f32.mrb[61].mxu1 }
 0x3c4   : > { %1112 = vmax.xlane.f32.xlu0 %v2236_v0  ;;  %v1018_v63 = vpop.f32.mrb[62].mxu1 }
 0x3c5   : > { %v1083_v2 = vadd.f32 %v2221_v37, %v1063_v60  ;;  %v1064_v4 = vadd.f32 %v1018_v63, %v2159_v6  ;;  %v1646_v5 = vpop.f32.mrb[63].mxu1 }
 0x3c7   : > { %v1084_v7 = vadd.f32 %v2221_v37, %v1064_v4  ;;  %v2244_v8 = vsel %vm1096_vm2, %v1083_v2, -1e+30 }
 0x3c8   : > { %1114 = vmax.xlane.f32.xlu1 %v2244_v8 }
 0x3c9   : > { %v2250_v13 = vsel %vm1096_vm2, %v1084_v7, -1e+30 }
 0x3ca   : > { %v1023_v3 = vpop.f32.mrb[64].mxu1 }
 0x3cb   : > { %v1065_v10 = vadd.f32 %v1023_v3, %v2161_v9  ;;  %v1649_v11 = vpop.f32.mrb[65].mxu1 }
 0x3cc   : > { %1116 = vmax.xlane.f32.xlu1 %v2250_v13  ;;  %v1026_v6 = vpop.f32.mrb[66].mxu1 }
 0x3cd   : > { %v1085_v14 = vadd.f32 %v2221_v37, %v1065_v10  ;;  %v1066_v16 = vadd.f32 %v1026_v6, %v2163_v12  ;;  %v1650_v17 = vpop.f32.mrb[67].mxu1 }
 0x3cf   : > { %v1086_v19 = vadd.f32 %v2221_v37, %v1066_v16  ;;  %v2258_v20 = vsel %vm1096_vm2, %v1085_v14, -1e+30 }
 0x3d0   : > { %1118 = vmax.xlane.f32.xlu0 %v2258_v20 }
 0x3d1   : > { %v2263_v9 = vsel %vm1096_vm2, %v1086_v19, -1e+30 }
 0x3d2   : > { %1120 = vmax.xlane.f32.xlu1 %v2263_v9  ;;  %v1031_v22 = vpop.f32.mrb[68].mxu1 }
 0x3d3   : > { %v1067_v23 = vadd.f32 %v1031_v22, %v2165_v15  ;;  %v1653_v25 = vpop.f32.mrb[69].mxu1 }
 0x3d4   : > { %v1034_v12 = vpop.f32.mrb[70].mxu1 }
 0x3d5   : > { %v1087_v26 = vadd.f32 %v2221_v37, %v1067_v23  ;;  %v1068_v29 = vadd.f32 %v1034_v12, %v2167_v18  ;;  %v1654_v30 = vpop.f32.mrb[71].mxu1 }
 0x3d7   : > { %v1088_v32 = vadd.f32 %v2221_v37, %v1068_v29  ;;  %v2272_v33 = vsel %vm1096_vm2, %v1087_v26, -1e+30 }
 0x3d8   : > { %1122 = vmax.xlane.f32.xlu0 %v2272_v33 }
 0x3d9   : > { %v2277_v34 = vsel %vm1096_vm2, %v1088_v32, -1e+30 }
 0x3da   : > { %1124 = vmax.xlane.f32.xlu1 %v2277_v34  ;;  %v1039_v15 = vpop.f32.mrb[72].mxu1 }
 0x3db   : > { %v1069_v35 = vadd.f32 %v1039_v15, %v2169_v21  ;;  %v1657_v36 = vpop.f32.mrb[73].mxu1 }
 0x3dc   : > { %v1042_v18 = vpop.f32.mrb[74].mxu1 }
 0x3dd   : > { %v1089_v39 = vadd.f32 %v2221_v37, %v1069_v35  ;;  %v1070_v40 = vadd.f32 %v1042_v18, %v2171_v24  ;;  %v1658_v41 = vpop.f32.mrb[75].mxu1 }
 0x3df   : > { %v1090_v42 = vadd.f32 %v2221_v37, %v1070_v40  ;;  %v2286_v43 = vsel %vm1096_vm2, %v1089_v39, -1e+30 }
 0x3e0   : > { %1126 = vmax.xlane.f32.xlu0 %v2286_v43 }
 0x3e1   : > { %v2291_v38 = vsel %vm1096_vm2, %v1090_v42, -1e+30 }
 0x3e2   : > { %1128 = vmax.xlane.f32.xlu1 %v2291_v38  ;;  %v1047_v21 = vpop.f32.mrb[76].mxu1 }
 0x3e3   : > { %v1071_v44 = vadd.f32 %v1047_v21, %v2173_v28  ;;  %v1661_v45 = vpop.f32.mrb[77].mxu1 }
 0x3e4   : > { %v1050_v24 = vpop.f32.mrb[78].mxu1 }
 0x3e5   : > { %v1091_v46 = vadd.f32 %v2221_v37, %v1071_v44  ;;  %v1072_v47 = vadd.f32 %v1050_v24, %v2175_v31  ;;  %v1662_v48 = vpop.f32.mrb[79].mxu1 }
 0x3e7   : > { %v1092_v49 = vadd.f32 %v2221_v37, %v1072_v47  ;;  %v2300_v50 = vsel %vm1096_vm2, %v1091_v46, -1e+30 }
 0x3e8   : > { %1130 = vmax.xlane.f32.xlu0 %v2300_v50 }
 0x3e9   : > { %v2305_v52 = vsel %vm1096_vm2, %v1092_v49, -1e+30 }
 0x3ea   : > { %1132 = vmax.xlane.f32.xlu1 %v2305_v52  ;;  %v1055_v28 = vpop.f32.mrb[80].mxu1 }
 0x3eb   : > { %v1073_v53 = vadd.f32 %v1055_v28, %v2177_v27  ;;  %v1665_v54 = vpop.f32.mrb[81].mxu1 }
 0x3ec   : > { %v1058_v31 = vpop.f32.mrb[82].mxu1 }
 0x3ed   : > { %v1093_v55 = vadd.f32 %v2221_v37, %v1073_v53  ;;  %v1666_v1 = vpop.f32.mrb[83].mxu1 }
 0x3ef   : > { %v2312_v56 = vsel %vm1096_vm2, %v1093_v55, -1e+30 }
 0x3f0   : > { %1134 = vmax.xlane.f32.xlu0 %v2312_v56 }
 0x44d   : > { %v2315_v57 = vpop.xlane.xlu0 %1110 }
 0x44e   : > { %v1136_v58 = vsub.f32 %v2230_v59, %v2315_v57 }
 0x450   : > { %v1149_v61 = vmul.f32 1.442695, %v1136_v58 }
 0x451   : > { %v2319_v60 = vpop.xlane.xlu0 %1112 }
 0x452   : > { %1723 = vpow2.f32 %v1149_v61  ;;  %v1137_v27 = vsub.f32 %v2236_v0, %v2319_v60 }
 0x454   : > { %v1151_v37 = vmul.f32 1.442695, %v1137_v27 }
 0x455   : > { %v2323_v62 = vpop.xlane.xlu1 %1114 }
 0x456   : > { %1725 = vpow2.f32 %v1151_v37  ;;  %v1138_v51 = vsub.f32 %v2244_v8, %v2323_v62 }
 0x458   : > { %v1153_v63 = vmul.f32 1.442695, %v1138_v51 }
 0x459   : > { %v2327_v2 = vpop.xlane.xlu1 %1116 }
 0x45a   : > { %1727 = vpow2.f32 %v1153_v63  ;;  %v1139_v4 = vsub.f32 %v2250_v13, %v2327_v2 }
 0x45c   : > { %v1724_v5 = vpop.eup %1723  ;;  %v1155_v7 = vmul.f32 1.442695, %v1139_v4 }
 0x45d   : > { %v2331_v3 = vpop.xlane.xlu0 %1118  ;;  %1175 = vadd.xlane.f32.xlu1 %v1724_v5 }
 0x45e   : > { %1729 = vpow2.f32 %v1155_v7  ;;  %v1140_v10 = vsub.f32 %v2258_v20, %v2331_v3 }
 0x45f   : > { %v2335_v11 = vpop.xlane.xlu1 %1120 }
 0x460   : > { %v1726_v6 = vpop.eup %1725  ;;  %v1157_v14 = vmul.f32 1.442695, %v1140_v10  ;;  %v1141_v16 = vsub.f32 %v2263_v9, %v2335_v11 }
 0x461   : > { %1177 = vadd.xlane.f32.xlu0 %v1726_v6 }
 0x462   : > { %1731 = vpow2.f32 %v1157_v14  ;;  %v1159_v17 = vmul.f32 1.442695, %v1141_v16 }
 0x464   : > { %v1728_v19 = vpop.eup %1727  ;;  %1733 = vpow2.f32 %v1159_v17 }
 0x465   : > { %v2339_v22 = vpop.xlane.xlu0 %1122  ;;  %1179 = vadd.xlane.f32.xlu1 %v1728_v19 }
 0x466   : > { %v1142_v23 = vsub.f32 %v2272_v33, %v2339_v22 }
 0x467   : > { %v2343_v25 = vpop.xlane.xlu1 %1124 }
 0x468   : > { %v1730_v12 = vpop.eup %1729  ;;  %v1161_v26 = vmul.f32 1.442695, %v1142_v23  ;;  %v1143_v29 = vsub.f32 %v2277_v34, %v2343_v25 }
 0x469   : > { %1181 = vadd.xlane.f32.xlu0 %v1730_v12 }
 0x46a   : > { %1735 = vpow2.f32 %v1161_v26  ;;  %v1163_v30 = vmul.f32 1.442695, %v1143_v29 }
 0x46c   : > { %v1732_v32 = vpop.eup %1731  ;;  %1737 = vpow2.f32 %v1163_v30 }
 0x46d   : > { %v2347_v15 = vpop.xlane.xlu0 %1126  ;;  %1183 = vadd.xlane.f32.xlu1 %v1732_v32 }
 0x46e   : > { %v1734_v35 = vpop.eup %1733  ;;  %v1144_v36 = vsub.f32 %v2286_v43, %v2347_v15 }
 0x46f   : > { %v2351_v18 = vpop.xlane.xlu1 %1128  ;;  %1185 = vadd.xlane.f32.xlu0 %v1734_v35 }
 0x470   : > { %v1165_v39 = vmul.f32 1.442695, %v1144_v36  ;;  %v1145_v40 = vsub.f32 %v2291_v38, %v2351_v18 }
 0x472   : > { %1739 = vpow2.f32 %v1165_v39  ;;  %v1167_v41 = vmul.f32 1.442695, %v1145_v40 }
 0x474   : > { %v1736_v42 = vpop.eup %1735  ;;  %1741 = vpow2.f32 %v1167_v41 }
 0x475   : > { %v2355_v21 = vpop.xlane.xlu0 %1130  ;;  %1187 = vadd.xlane.f32.xlu1 %v1736_v42 }
 0x476   : > { %v1738_v44 = vpop.eup %1737  ;;  %v1146_v45 = vsub.f32 %v2300_v50, %v2355_v21 }
 0x477   : > { %v2359_v24 = vpop.xlane.xlu1 %1132  ;;  %1189 = vadd.xlane.f32.xlu0 %v1738_v44 }
 0x478   : > { %v1169_v46 = vmul.f32 1.442695, %v1146_v45  ;;  %v1147_v47 = vsub.f32 %v2305_v52, %v2359_v24 }
 0x47a   : > { %1743 = vpow2.f32 %v1169_v46  ;;  %v1171_v48 = vmul.f32 1.442695, %v1147_v47 }
 0x47c   : > { %v1740_v49 = vpop.eup %1739  ;;  %1745 = vpow2.f32 %v1171_v48 }
 0x47d   : > { %1191 = vadd.xlane.f32.xlu1 %v1740_v49  ;;  %v2363_v28 = vpop.xlane.xlu0 %1134 }
 0x47e   : > { %v1742_v53 = vpop.eup %1741  ;;  %v1148_v54 = vsub.f32 %v2312_v56, %v2363_v28 }
 0x47f   : > { %1193 = vadd.xlane.f32.xlu0 %v1742_v53 }
 0x480   : > { %v1173_v31 = vmul.f32 1.442695, %v1148_v54 }
 0x482   : > { %1747 = vpow2.f32 %v1173_v31 }
 0x484   : > { %v1744_v55 = vpop.eup %1743 }
 0x485   : > { %1195 = vadd.xlane.f32.xlu1 %v1744_v55 }
 0x486   : > { %v1746_v1 = vpop.eup %1745 }
 0x487   : > { %1197 = vadd.xlane.f32.xlu0 %v1746_v1 }
 0x48c   : > { %v1748_v58 = vpop.eup %1747 }
 0x48d   : > { %1199 = vadd.xlane.f32.xlu1 %v1748_v58 }
 0x4ea   : > { %v1176_v61 = vpop.xlane.xlu1 %1175 }
 0x4eb   : > { %1749 = vlog2.f32 %v1176_v61 }
 0x4ee   : > { %v1178_v27 = vpop.xlane.xlu0 %1177 }
 0x4ef   : > { %1751 = vlog2.f32 %v1178_v27 }
 0x4f2   : > { %v1180_v37 = vpop.xlane.xlu1 %1179 }
 0x4f3   : > { %1753 = vlog2.f32 %v1180_v37 }
 0x4f5   : > { %v1750_v51 = vpop.eup %1749 }
 0x4f6   : > { %v1202_v63 = vmul.f32 0.6931472, %v1750_v51  ;;  %v1182_v4 = vpop.xlane.xlu0 %1181 }
 0x4f7   : > { %1755 = vlog2.f32 %v1182_v4 }
 0x4f8   : > { %v1227_v5 = vadd.f32 %v1202_v63, %v2315_v57 }
 0x4f9   : > { %v1752_v7 = vpop.eup %1751 }
 0x4fa   : > { %v1240_v10 = vsub.f32 %v2230_v59, %v1227_v5  ;;  %v1204_v6 = vmul.f32 0.6931472, %v1752_v7  ;;  %v1184_v14 = vpop.xlane.xlu1 %1183 }
 0x4fb   : > { %1757 = vlog2.f32 %v1184_v14 }
 0x4fc   : > { %1253 = vst [vmem:[%s2372_s18] sm:$0xff] %v1240_v10  ;;  %v1228_v16 = vadd.f32 %v1204_v6, %v2319_v60  ;;  %v1186_v17 = vpop.xlane.xlu0 %1185 }
 0x4fd   : > { %v1754_v19 = vpop.eup %1753  ;;  %1759 = vlog2.f32 %v1186_v17 }
 0x4fe   : > { %v1241_v23 = vsub.f32 %v2236_v0, %v1228_v16  ;;  %v1206_v57 = vmul.f32 0.6931472, %v1754_v19 }
 0x500   : > { %1254 = vst [vmem:[%s2372_s18 + $0x8] sm:$0xff] %v1241_v23  ;;  %v1229_v59 = vadd.f32 %v1206_v57, %v2323_v62 }
 0x501   : > { %v1756_v12 = vpop.eup %1755 }
 0x502   : > { %v1242_v26 = vsub.f32 %v2244_v8, %v1229_v59  ;;  %v1208_v29 = vmul.f32 0.6931472, %v1756_v12  ;;  %v1188_v30 = vpop.xlane.xlu1 %1187 }
 0x503   : > { %1761 = vlog2.f32 %v1188_v30 }
 0x504   : > { %1255 = vst [vmem:[%s2372_s18 + $0x10] sm:$0xff] %v1242_v26  ;;  %v1230_v60 = vadd.f32 %v1208_v29, %v2327_v2  ;;  %v1190_v32 = vpop.xlane.xlu0 %1189 }
 0x505   : > { %v1758_v35 = vpop.eup %1757  ;;  %1763 = vlog2.f32 %v1190_v32 }
 0x506   : > { %v1243_v0 = vsub.f32 %v2250_v13, %v1230_v60  ;;  %v1210_v36 = vmul.f32 0.6931472, %v1758_v35 }
 0x507   : > { %v1760_v39 = vpop.eup %1759 }
 0x508   : > { %1256 = vst [vmem:[%s2372_s18 + $0x18] sm:$0xff] %v1243_v0  ;;  %v1231_v62 = vadd.f32 %v1210_v36, %v2331_v3  ;;  %v1212_v40 = vmul.f32 0.6931472, %v1760_v39 }
 0x50a   : > { %v1244_v8 = vsub.f32 %v2258_v20, %v1231_v62  ;;  %v1232_v41 = vadd.f32 %v1212_v40, %v2335_v11  ;;  %v1192_v42 = vpop.xlane.xlu1 %1191 }
 0x50b   : > { %1765 = vlog2.f32 %v1192_v42 }
 0x50c   : > { %1257 = vst [vmem:[%s2372_s18 + $0x20] sm:$0xff] %v1244_v8  ;;  %v1245_v2 = vsub.f32 %v2263_v9, %v1232_v41  ;;  %v1194_v44 = vpop.xlane.xlu0 %1193 }
 0x50d   : > { %v1762_v45 = vpop.eup %1761  ;;  %1767 = vlog2.f32 %v1194_v44 }
 0x50e   : > { %1258 = vst [vmem:[%s2372_s18 + $0x28] sm:$0xff] %v1245_v2  ;;  %v1214_v13 = vmul.f32 0.6931472, %v1762_v45 }
 0x50f   : > { %v1764_v46 = vpop.eup %1763 }
 0x510   : > { %v1233_v3 = vadd.f32 %v1214_v13, %v2339_v22  ;;  %v1216_v47 = vmul.f32 0.6931472, %v1764_v46 }
 0x512   : > { %v1246_v20 = vsub.f32 %v2272_v33, %v1233_v3  ;;  %v1234_v11 = vadd.f32 %v1216_v47, %v2343_v25  ;;  %v1196_v48 = vpop.xlane.xlu1 %1195 }
 0x513   : > { %1769 = vlog2.f32 %v1196_v48 }
 0x514   : > { %1259 = vst [vmem:[%s2372_s18 + $0x30] sm:$0xff] %v1246_v20  ;;  %v1247_v9 = vsub.f32 %v2277_v34, %v1234_v11  ;;  %v1198_v49 = vpop.xlane.xlu0 %1197 }
 0x515   : > { %v1766_v53 = vpop.eup %1765  ;;  %1771 = vlog2.f32 %v1198_v49 }
 0x516   : > { %1260 = vst [vmem:[%s2372_s18 + $0x38] sm:$0xff] %v1247_v9  ;;  %v1218_v54 = vmul.f32 0.6931472, %v1766_v53 }
 0x517   : > { %v1768_v31 = vpop.eup %1767 }
 0x518   : > { %v1235_v22 = vadd.f32 %v1218_v54, %v2347_v15  ;;  %v1220_v55 = vmul.f32 0.6931472, %v1768_v31 }
 0x51a   : > { %v1248_v33 = vsub.f32 %v2286_v43, %v1235_v22  ;;  %v1236_v25 = vadd.f32 %v1220_v55, %v2351_v18  ;;  %v1200_v1 = vpop.xlane.xlu1 %1199 }
 0x51b   : > { %1773 = vlog2.f32 %v1200_v1 }
 0x51c   : > { %1261 = vst [vmem:[%s2372_s18 + $0x40] sm:$0xff] %v1248_v33  ;;  %v1249_v34 = vsub.f32 %v2291_v38, %v1236_v25 }
 0x51d   : > { %v1770_v58 = vpop.eup %1769 }
 0x51e   : > { %1262 = vst [vmem:[%s2372_s18 + $0x48] sm:$0xff] %v1249_v34  ;;  %v1222_v61 = vmul.f32 0.6931472, %v1770_v58 }
 0x51f   : > { %v1772_v27 = vpop.eup %1771 }
 0x520   : > { %v1237_v15 = vadd.f32 %v1222_v61, %v2355_v21  ;;  %v1224_v37 = vmul.f32 0.6931472, %v1772_v27 }
 0x522   : > { %v1250_v43 = vsub.f32 %v2300_v50, %v1237_v15  ;;  %v1238_v18 = vadd.f32 %v1224_v37, %v2359_v24 }
 0x524   : > { %1263 = vst [vmem:[%s2372_s18 + $0x50] sm:$0xff] %v1250_v43  ;;  %v1251_v51 = vsub.f32 %v2305_v52, %v1238_v18 }
 0x525   : > { %v1774_v63 = vpop.eup %1773 }
 0x526   : > { %1264 = vst [vmem:[%s2372_s18 + $0x58] sm:$0xff] %v1251_v51  ;;  %v1226_v38 = vmul.f32 0.6931472, %v1774_v63 }
 0x528   : > { %v1239_v4 = vadd.f32 %v1226_v38, %v2363_v28 }
 0x52a   : > { %v1252_v50 = vsub.f32 %v2312_v56, %v1239_v4 }
 0x52c   : > { %1265 = vst [vmem:[%s2372_s18 + $0x60] sm:$0xff] %v1252_v50 }
 0x52d   : > { %1788 = shalt.err (!%p1785_p3)
}
 0x52e   : > { %s1789_s13 = scalar_lea.hbm %s2414_s29, 1664  ;;  %s1793_s16 = scalar_lea.hbm %s2469_s6, 3328 }
 0x52f   : > { %p1790_p4 = scmp.ne.s32.totalorder %s2414_s29, %s1789_s13  ;;  %p1794_p9 = scmp.lt.u32.totalorder %s2414_s29, %s2469_s6 }
 0x530   : > { %p1795_p10 = scmp.lt.u32.totalorder %s1793_s16, %s1789_s13  ;;  %p1797_p12 = scmp.lt.u32.totalorder %s1789_s13, %s2414_s29 }
 0x531   : > { %p1791_p7 = pnand %p1790_p4, %p1917_p5 }
 0x532   : > { %p1796_p11 = por %p1795_p10, %p1794_p9 }
 0x533   : > { %p1792_p8 = pneg %p1791_p7 }
 0x534   : > { %p1798_p13 = por %p1797_p12, %p1796_p11 }
 0x536   : > { %p1799_p0 = pnand %p1798_p13, %p1792_p8 }
 0x538   : > { %1802 = shalt.err (!%p1799_p0)
}
 0x539   : > { %s1842_s19 = smov 128   ;;  %s1843_s26 = smov 8  }
 0x53a   : > { %1668 = dma.vmem_to_hbm [thread:$0]  (%p1917_p5), %s2416_s20, 1664, %s2414_s29, %s2422_s25, %s1842_s19, %s1842_s19, %s1843_s26  }
 0x53b PF: > { %p1674_p1 = scmp.ge.s32.totalorder %s1837_s24, 2  ;;  %s1295_s28 = sand.u32 1, %s1825_s21  }
 0x53c   : > { %s1296_s9 = scalar_lea.sflag [#allocation3], %s1295_s28 }
 0x53d   : > { %p1671_p2 = pnand %p1674_p1, %p1921_p6 }
 0x53f   : > { %1820 = dma.done.wait (!%p1671_p2), %s1296_s9, 1664  }
 0x540   : > { %1822 = vsyncadd (!%p1671_p2), %s1296_s9, 4294965632  ;;  %p16_p3 = scmp.ge.s32.totalorder %s1904_s27, 4   ;;  %s2472_s21 = smov %s1829_s22 }
 0x541   : > { %s2473_s22 = smov %s1833_s23  ;;  %s2474_s23 = smov %s1915_s30 }
 0x542   : > { %s2475_s24 = smov %s1904_s27  ;;  %18 = sbr.rel (!%p16_p3) target bundleno = 3 (0x3), region = 82 }
 0x549   :  { %1301 = vsyncpa [#allocation3], 1 }
 0x54a   :  { %1303 = vsyncpa [#allocation3 + $0x1], 1 }

</bundles_post_ra>
